<compile_context>
chip_gen: v7x
topology: tpu7x:2x2x1
jax: 0.10.0
libtpu: 0.0.40
codegen_flags: <defaults>
</compile_context>

<pallas_src>
import jax
import jax.numpy as jnp
from jax.experimental import pallas as pl
from jax.experimental.pallas import tpu as pltpu


def _round_up(x: int, m: int) -> int:
    return ((x + m - 1) // m) * m


def _linear_relu_single_k_kernel(x_ref, w_ref, b_ref, o_ref):
    """Whole reduction in one tile: dot -> +bias -> ReLU -> one lane-dense store."""
    acc = jnp.dot(x_ref[...], w_ref[...], preferred_element_type=jnp.float32)
    acc = acc + b_ref[...]
    o_ref[...] = jnp.maximum(acc, 0.0).astype(o_ref.dtype)


def _linear_relu_acc_kernel(x_ref, w_ref, b_ref, o_ref, acc_ref):
    """(tm, tn) output tile; grid axis 2 iterates K with an f32 VMEM accumulator.

    Bias is folded into the k==0 init; the last K step applies ReLU and stores.
    """
    k = pl.program_id(2)

    @pl.when(k == 0)
    def _init():
        acc_ref[...] = jnp.broadcast_to(b_ref[...], acc_ref.shape)

    # bf16 x bf16 -> f32 accumulate on the MXU.
    acc_ref[...] += jnp.dot(x_ref[...], w_ref[...],
                            preferred_element_type=jnp.float32)

    @pl.when(k == pl.num_programs(2) - 1)
    def _epilogue():
        o_ref[...] = jnp.maximum(acc_ref[...], 0.0).astype(o_ref.dtype)


def rpc_shard_forward(x, w, b, *, tm=256, tk=512, tn=512,
                      out_dtype=jnp.float32):
    """Pallas equivalent of shard.remote().forward(x_rref) -> relu(x @ W + b).

    x: [B, Din] f32, w: [Din, Dout] f32, b: [Dout] f32.
    Operands are cast to bf16 for the MXU; accumulation / epilogue are f32.
    """
    B, Din = x.shape
    Dout = w.shape[1]

    # Clamp tiles to the (padded) problem size while keeping (8, 128) layout.
    tm = min(tm, _round_up(B, 8))
    tk = min(tk, _round_up(Din, 128))
    tn = min(tn, _round_up(Dout, 128))
    Mp = _round_up(B, tm)
    Kp = _round_up(Din, tk)
    Np = _round_up(Dout, tn)

    # Host-side padding to tile multiples; zero K-padding is exact for the dot,
    # padded rows/cols are sliced off after the call.
    xp = jnp.pad(x.astype(jnp.bfloat16), ((0, Mp - B), (0, Kp - Din)))
    wp = jnp.pad(w.astype(jnp.bfloat16), ((0, Kp - Din), (0, Np - Dout)))
    bp = jnp.pad(b.astype(jnp.float32).reshape(1, Dout),
                 ((0, 0), (0, Np - Dout)))

    grid_m, grid_n, grid_k = Mp // tm, Np // tn, Kp // tk

    if grid_k == 1:
        # Fast path: no scratch accumulator, no predicates, 2-D grid.
        out_padded = pl.pallas_call(
            _linear_relu_single_k_kernel,
            out_shape=jax.ShapeDtypeStruct((Mp, Np), out_dtype),
            grid_spec=pltpu.PrefetchScalarGridSpec(
                num_scalar_prefetch=0,
                grid=(grid_m, grid_n),
                in_specs=[
                    pl.BlockSpec((tm, tk), lambda i, j: (i, 0)),   # activations
                    pl.BlockSpec((tk, tn), lambda i, j: (0, j)),   # weights
                    pl.BlockSpec((1, tn), lambda i, j: (0, j)),    # bias
                ],
                out_specs=pl.BlockSpec((tm, tn), lambda i, j: (i, j)),
            ),
            compiler_params=pltpu.CompilerParams(
                dimension_semantics=("parallel", "parallel")),
        )(xp, wp, bp)
    else:
        out_padded = pl.pallas_call(
            _linear_relu_acc_kernel,
            out_shape=jax.ShapeDtypeStruct((Mp, Np), out_dtype),
            grid_spec=pltpu.PrefetchScalarGridSpec(
                num_scalar_prefetch=0,
                grid=(grid_m, grid_n, grid_k),
                in_specs=[
                    pl.BlockSpec((tm, tk), lambda i, j, k: (i, k)),  # activations
                    pl.BlockSpec((tk, tn), lambda i, j, k: (k, j)),  # weights
                    pl.BlockSpec((1, tn), lambda i, j, k: (0, j)),   # bias
                ],
                out_specs=pl.BlockSpec((tm, tn), lambda i, j, k: (i, j)),
                scratch_shapes=[pltpu.VMEM((tm, tn), jnp.float32)],
            ),
            compiler_params=pltpu.CompilerParams(
                dimension_semantics=("parallel", "parallel", "arbitrary")),
        )(xp, wp, bp)

    return out_padded[:B, :Dout]


class RemoteBaseCUDARPCJAX:
    """Mirrors RemoteBaseCUDARPC: forward dispatches to the underlying shard's
    forward on the (single, local) device; RPC transport is elided."""

    def __init__(self, w, b):
        self.w = w
        self.b = b

    def forward(self, x):
        return rpc_shard_forward(x, self.w, self.b)


if __name__ == "__main__":
    # Small MNIST-fc-shard-like shapes.  Deliberately not tile-aligned
    # (Dout=160) so the padding path is exercised.  With the explicit test
    # tiles (tm, tk, tn) = (8, 128, 128) the grid is (2, 2, 2), exercising the
    # K-accumulation kernel; the default-tile call below clamps to a single K
    # tile and exercises the single-pass kernel.
    B, D_IN, D_OUT = 16, 256, 160

    key = jax.random.PRNGKey(0)
    kx, kw, kb = jax.random.split(key, 3)

    x = jax.random.normal(kx, (B, D_IN), dtype=jnp.float32)
    bound = 1.0 / (D_IN ** 0.5)
    w = jax.random.uniform(kw, (D_IN, D_OUT), minval=-bound, maxval=bound,
                           dtype=jnp.float32)
    b = jax.random.uniform(kb, (D_OUT,), minval=-bound, maxval=bound,
                           dtype=jnp.float32)

    # Reference with the same bf16 operand rounding (accumulation in f32).
    x16 = x.astype(jnp.bfloat16).astype(jnp.float32)
    w16 = w.astype(jnp.bfloat16).astype(jnp.float32)
    ref = jnp.maximum(x16 @ w16 + b[None, :], 0.0)

    # Multi-K accumulation path.
    out = rpc_shard_forward(x, w, b, tm=8, tk=128, tn=128)
    out = jax.block_until_ready(out)
    assert out.shape == (B, D_OUT)
    assert jnp.allclose(out, ref, atol=1e-2, rtol=1e-2), (
        float(jnp.max(jnp.abs(out - ref))))

    # Default-tile (clamped) single-K-pass path via the module-like wrapper.
    wrapper = RemoteBaseCUDARPCJAX(w, b)
    out2 = jax.block_until_ready(wrapper.forward(x))
    assert out2.shape == (B, D_OUT)
    assert jnp.allclose(out2, ref, atol=1e-2, rtol=1e-2), (
        float(jnp.max(jnp.abs(out2 - ref))))

    print("KERNEL_OK")
</pallas_src>

<mosaic_0001>
module attributes {stable_mosaic.version = 11 : i64} {
  func.func @_linear_relu_acc_kernel(%arg0: i32, %arg1: i32, %arg2: i32, %arg3: memref<8x128xbf16, #tpu.memory_space<vmem>>, %arg4: memref<128x128xbf16, #tpu.memory_space<vmem>>, %arg5: memref<1x128xf32, #tpu.memory_space<vmem>>, %arg6: memref<8x128xf32, #tpu.memory_space<vmem>>, %arg7: memref<8x128xf32, #tpu.memory_space<vmem>>) attributes {dimension_semantics = [#tpu.dimension_semantics<parallel>, #tpu.dimension_semantics<parallel>, #tpu.dimension_semantics<arbitrary>], iteration_bounds = array<i64: 2, 2, 2>, scalar_prefetch = 0 : i64, scratch_operands = 1 : i64, tpu.core_type = #tpu.core_type<tc>, window_params = [{transform_indices = @transform_0, window_bounds = array<i64: 8, 128>}, {transform_indices = @transform_1, window_bounds = array<i64: 128, 128>}, {transform_indices = @transform_2, window_bounds = array<i64: 1, 128>}, {transform_indices = @transform_3, window_bounds = array<i64: 8, 128>}]} {
    %c0_i32 = arith.constant 0 : i32
    %0 = arith.cmpi eq, %arg2, %c0_i32 : i32
    %1 = arith.extui %0 : i1 to i32
    %c0_i32_0 = arith.constant 0 : i32
    %2 = arith.cmpi ne, %1, %c0_i32_0 : i32
    scf.if %2 {
      %c0_9 = arith.constant 0 : index
      %c0_10 = arith.constant 0 : index
      %12 = vector.load %arg5[%c0_9, %c0_10] : memref<1x128xf32, #tpu.memory_space<vmem>>, vector<1x128xf32>
      %13 = vector.shape_cast %12 : vector<1x128xf32> to vector<1x128xf32>
      %14 = vector.broadcast %13 : vector<1x128xf32> to vector<8x128xf32>
      %c0_11 = arith.constant 0 : index
      %c0_12 = arith.constant 0 : index
      %15 = vector.load %arg7[%c0_11, %c0_12] : memref<8x128xf32, #tpu.memory_space<vmem>>, vector<8x128xf32>
      tpu.vector_store %arg7[%c0_11, %c0_12], %14 {strides = array<i32>} : memref<8x128xf32, #tpu.memory_space<vmem>>, vector<8x128xf32>,
    } else {
    }
    %c0 = arith.constant 0 : index
    %c0_1 = arith.constant 0 : index
    %3 = vector.load %arg7[%c0, %c0_1] : memref<8x128xf32, #tpu.memory_space<vmem>>, vector<8x128xf32>
    %c0_2 = arith.constant 0 : index
    %c0_3 = arith.constant 0 : index
    %4 = vector.load %arg3[%c0_2, %c0_3] : memref<8x128xbf16, #tpu.memory_space<vmem>>, vector<8x128xbf16>
    %c0_4 = arith.constant 0 : index
    %c0_5 = arith.constant 0 : index
    %5 = vector.load %arg4[%c0_4, %c0_5] : memref<128x128xbf16, #tpu.memory_space<vmem>>, vector<128x128xbf16>
    %cst = arith.constant dense<0.000000e+00> : vector<8x128xf32>
    %6 = tpu.matmul %4, %5, %cst {dimension_numbers = #tpu.dot_dimension_numbers<[1], [0], [0], [1], [0, 0, 1, 1], [], []>} : vector<8x128xbf16>, vector<128x128xbf16>, vector<8x128xf32> -> vector<8x128xf32>
    %7 = arith.addf %3, %6 : vector<8x128xf32>
    %c0_6 = arith.constant 0 : index
    %c0_7 = arith.constant 0 : index
    %8 = vector.load %arg7[%c0_6, %c0_7] : memref<8x128xf32, #tpu.memory_space<vmem>>, vector<8x128xf32>
    tpu.vector_store %arg7[%c0_6, %c0_7], %7 {strides = array<i32>} : memref<8x128xf32, #tpu.memory_space<vmem>>, vector<8x128xf32>,
    %c1_i32 = arith.constant 1 : i32
    %9 = arith.cmpi eq, %arg2, %c1_i32 : i32
    %10 = arith.extui %9 : i1 to i32
    %c0_i32_8 = arith.constant 0 : i32
    %11 = arith.cmpi ne, %10, %c0_i32_8 : i32
    scf.if %11 {
      %c0_9 = arith.constant 0 : index
      %c0_10 = arith.constant 0 : index
      %12 = vector.load %arg7[%c0_9, %c0_10] : memref<8x128xf32, #tpu.memory_space<vmem>>, vector<8x128xf32>
      %cst_11 = arith.constant 0.000000e+00 : f32
      %13 = vector.broadcast %cst_11 : f32 to vector<8x128xf32>
      %14 = arith.maximumf %12, %13 : vector<8x128xf32>
      %c0_12 = arith.constant 0 : index
      %c0_13 = arith.constant 0 : index
      %15 = vector.load %arg6[%c0_12, %c0_13] : memref<8x128xf32, #tpu.memory_space<vmem>>, vector<8x128xf32>
      tpu.vector_store %arg6[%c0_12, %c0_13], %14 {strides = array<i32>} : memref<8x128xf32, #tpu.memory_space<vmem>>, vector<8x128xf32>,
    } else {
    }
    return
  }
  func.func @transform_0(%arg0: i32, %arg1: i32, %arg2: i32) -> (i32, i32) {
    %c0_i32 = arith.constant 0 : i32
    return %arg0, %arg2 : i32, i32
  }
  func.func @transform_1(%arg0: i32, %arg1: i32, %arg2: i32) -> (i32, i32) {
    %c0_i32 = arith.constant 0 : i32
    return %arg2, %arg1 : i32, i32
  }
  func.func @transform_2(%arg0: i32, %arg1: i32, %arg2: i32) -> (i32, i32) {
    %c0_i32 = arith.constant 0 : i32
    %c0_i32_0 = arith.constant 0 : i32
    return %c0_i32, %arg1 : i32, i32
  }
  func.func @transform_3(%arg0: i32, %arg1: i32, %arg2: i32) -> (i32, i32) {
    %c0_i32 = arith.constant 0 : i32
    return %arg0, %arg1 : i32, i32
  }
}

</mosaic_0001>

<bundles_post_ra>
// kernel: tpu_custom_call.1
= control target key start
LH: loop header
LB: loop body
LE: loop exit
PB: predicated region body
PF: predicated region fallthrough
CT: control target
= control target key end

     0   :  { %s1408_s0 = inlined_call_operand.hbm [shape: bf16[16,256], index: 0, kind: input, shape index: {}]   ;;  %s1409_s1 = inlined_call_operand.hbm [shape: bf16[256,256], index: 1, kind: input, shape index: {}]   ;;  %s1410_s2 = inlined_call_operand.vmem [shape: f32[1,256], index: 2, kind: input, shape index: {}]   ;;  %s1411_s3 = inlined_call_operand.hbm [shape: f32[16,256], index: 3, kind: output, shape index: {}]  }
   0x1   :  { %1424 = sst [smem:[#allocation21_spill]] %s1408_s0 }
   0x2   :  { %1425 = sst [smem:[#allocation22_spill]] %s1411_s3 }
   0x3   :  { %8 = vsyncpa [#allocation4], 0 }
   0x4   :  { %10 = vsyncpa [#allocation4 + $0x1], 0 }
   0x5   :  { %11 = vsyncpa [#allocation7], 0 }
   0x6   :  { %13 = vsyncpa [#allocation7 + $0x1], 0 }
   0x7   :  { %14 = vsyncpa [#allocation5], 0 }
   0x8   :  { %16 = vsyncpa [#allocation5 + $0x1], 0  ;;  %s1016_s12 = smov 0   ;;  %s1018_s13 = smov 0  }
   0x9   :  { %s1020_s14 = smov 0   ;;  %s1022_s15 = smov 0  }
   0xa   :  { %s1024_s16 = smov 0   ;;  %s1026_s17 = smov 0  }
   0xb   :  { %s1028_s18 = smov 0   ;;  %s1030_s19 = smov 0  }
   0xc   :  { %s1032_s20 = smov 0   ;;  %s1034_s21 = smov 0  }
   0xd   :  { %s1036_s22 = smov 0   ;;  %s1038_s23 = smov 0  }
   0xe   :  { %s1040_s24 = smov 0   ;;  %s1042_s25 = smov 0  }
   0xf   :  { %s1044_s26 = smov 0   ;;  %s1046_s27 = smov 0  }
  0x10 LB: > { %1426 = sst [smem:[#allocation12_spill]] %s926_s12  ;;  %s1412_s28 = sadd.s32 4294967295, %s986_s27   ;;  %s986_s27 = sphi %s1046_s27, %s22_s27   ;;  %s982_s26 = sphi %s1044_s26, %s1478_s26   ;;  %s978_s25 = sphi %s1042_s25, %s1477_s25   ;;  %s974_s24 = sphi %s1040_s24, %s1476_s24   ;;  %s970_s23 = sphi %s1038_s23, %s1475_s23   ;;  %s966_s22 = sphi %s1036_s22, %s1474_s22   ;;  %s962_s21 = sphi %s1034_s21, %s1473_s21   ;;  %s958_s20 = sphi %s1032_s20, %s1472_s20   ;;  %s954_s19 = sphi %s1030_s19, %s1471_s19   ;;  %s950_s18 = sphi %s1028_s18, %s1470_s18   ;;  %s946_s17 = sphi %s1026_s17, %s1469_s17   ;;  %s942_s16 = sphi %s1024_s16, %s1468_s16   ;;  %s938_s15 = sphi %s1022_s15, %s1467_s15   ;;  %s934_s14 = sphi %s1020_s14, %s1459_s14   ;;  %s930_s13 = sphi %s1018_s13, %s1466_s13   ;;  %s926_s12 = sphi %s1016_s12, %s1465_s12  }
  0x11   : > { %1427 = sst [smem:[#allocation13_spill]] %s934_s14  ;;  %s34_s30 = sadd.s32 1, %s974_s24 }
  0x12   : > { %s37_s4 = sadd.s32 1, %s978_s25  ;;  %p35_p0 = scmp.ge.s32.totalorder %s34_s30, 2 }
  0x13   : > { %s41_s5 = sadd.s32 1, %s982_s26  ;;  %s50_s6 = sadd.s32 1, %s958_s20 }
  0x14   : > { %p57_p1 = scmp.ne.s32.totalorder %s958_s20, %s954_s19  ;;  %s1480_s30 = smov (%p35_p0, %s34_s30), 0 }
  0x15   : > { %1428 = sst [smem:[#allocation14_spill]] %s1480_s30  ;;  %s1482_s4 = smov (!%p35_p0, %s37_s4), %s978_s25 }
  0x16   : > { %s46_s7 = ssub.s32 %s974_s24, %s1480_s30  ;;  %p58_p2 = scmp.eq.s32.totalorder %s986_s27, 0 }
  0x17   : > { %p39_p3 = scmp.ge.s32.totalorder %s1482_s4, 2  ;;  %p63_p4 = scmp.ne.s32.totalorder %s954_s19, %s950_s18 }
  0x18   : > { %p1111_p5 = por %p58_p2, %p57_p1  ;;  %p1117_p6 = scmp.eq.s32.totalorder %s1412_s28, 0 }
  0x19   : > { %s1484_s4 = smov (%p39_p3, %s1482_s4), 0  ;;  %s1486_s5 = smov (!%p39_p3, %s41_s5), %s982_s26 }
  0x1a   : > { %1431 = sst [smem:[#allocation15_spill]] %s1484_s4  ;;  %p1126_p7 = por %p1117_p6, %p63_p4 }
  0x1b   : > { %s74_s11 = ssub.s32 %s978_s25, %s1484_s4  ;;  %p43_p8 = scmp.ge.s32.totalorder %s1486_s5, 2 }
  0x1c   : > { %s1432_s10 = scalar_select %p1126_p7, 1, 0 }
  0x1d   : > { %s75_s18 = sor.u32 %s74_s11, %s46_s7  ;;  %s78_s29 = sadd.s32 1, %s946_s17 }
  0x1e   : > { %p76_p9 = scmp.eq.s32.totalorder %s75_s18, 0  ;;  %s1488_s5 = smov (%p43_p8, %s1486_s5), 0 }
  0x1f   : > { %1433 = sst [smem:[#allocation16_spill]] %s1488_s5  ;;  %s45_s30 = ssub.s32 %s982_s26, %s1488_s5 }
  0x20   : > { %s1136_s28 = scalar_select %p76_p9, %s946_s17, %s78_s29  }
  0x21   : > { %p85_p10 = scmp.ne.s32.totalorder %s946_s17, %s942_s16  ;;  %s47_s4 = sor.u32 %s46_s7, %s45_s30 }
  0x22   : > { %1434 = sst [smem:[#allocation17_spill]] %s1136_s28  ;;  %p91_p11 = scmp.ne.s32.totalorder %s942_s16, %s938_s15 }
  0x23   : > { %p48_p12 = scmp.eq.s32.totalorder %s47_s4, 0  ;;  %p1146_p13 = por %p85_p10, %p58_p2 }
  0x24   : > { %p1152_p0 = por %p91_p11, %p1117_p6  ;;  %s129_s5 = sor.u32 %s74_s11, %s45_s30 }
  0x25   : > { %s1157_s28 = scalar_select %p48_p12, %s958_s20, %s50_s6  }
  0x26   : > { %s1436_s29 = scalar_select %p1152_p0, 1, 0 }
  0x27   : > { %1437 = sst [smem:[#allocation18_spill]] %s1157_s28  ;;  %p130_p1 = scmp.eq.s32.totalorder %s129_s5, 0 }
  0x28   : > { %s132_s7 = sadd.s32 1, %s934_s14  ;;  %p142_p3 = scmp.ne.s32.totalorder %s934_s14, %s930_s13 }
  0x29   : > { %s1438_s15 = sadd.s32 4294967295, %s986_s27   ;;  %p148_p6 = scmp.ne.s32.totalorder %s930_s13, %s926_s12 }
  0x2a   : > { %p143_p4 = scmp.eq.s32.totalorder %s1438_s15, 7  ;;  %s1442_s30 = sadd.s32 4294967294, %s986_s27  }
  0x2b   : > { %s1165_s4 = scalar_select %p130_p1, %s934_s14, %s132_s7  }
  0x2c   : > { %p1167_p2 = por %p143_p4, %p142_p3  ;;  %p149_p8 = scmp.eq.s32.totalorder %s1442_s30, 7 }
  0x2d   : > { %1439 = sst [smem:[#allocation19_spill]] %s1165_s4  ;;  %p617_p9 = scmp.lt.s32.totalorder %s986_s27, 8 }
  0x2e   : > { %s1440_s9 = scalar_select %p1167_p2, 1, 0 }
  0x2f   : > { %s169_s5 = sand.u32 1, %s958_s20   ;;  %p1177_p10 = por %p149_p8, %p148_p6 }
  0x30   : > { %1441 = sst [smem:[#allocation20_spill]] %s1440_s9  ;;  %s543_s11 = sshll.u32 %s169_s5, 2 }
  0x31   : > { %s1443_s6 = scalar_select %p1177_p10, 1, 0 }
  0x32   : > { %s544_s7 = sshll.u32 %s982_s26, 1  ;;  %s173_s4 = scalar_lea.vmem [#allocation3], %s543_s11 }
  0x33   : > { %s178_s15 = sadd.s32 %s974_s24, %s544_s7  ;;  %s182_s14 = sshll.u32 %s173_s4, 4  ;;  %s1188_s14 = int_to_ptr.vmem [resolvable:$true] %s182_s14 }
  0x34   : > { %s545_s28 = sshll.u32 %s178_s15, 6  ;;  %s1444_s0 = sld [smem:[#allocation21_spill]] }
  0x35   : > { %p1194_p11 = pnand %p617_p9, %p1111_p5  ;;  %s570_s4 = sshll.u32 %s974_s24, 5 }
  0x36   : > { %p1203_p12 = pnand %p617_p9, %p1146_p13 }
  0x37   : > { %p762_p6 = pneg %p1194_p11 }
  0x3a   : > { %s1186_s12 = scalar_lea.hbm %s1444_s0, %s545_s28  ;;  %s170_s28 = scalar_lea.sflag [#allocation4], %s169_s5 }
  0x3b   : > { %s760_s9 = scalar_lea.hbm %s1186_s12, 64  ;;  %s765_s18 = scalar_lea.hbm %s1444_s0, 256 }
  0x3c   : > { %p761_p4 = scmp.ne.s32.totalorder %s1186_s12, %s760_s9  ;;  %p766_p13 = scmp.lt.u32.totalorder %s1186_s12, %s1444_s0 }
  0x3d   : > { %p767_p9 = scmp.lt.u32.totalorder %s765_s18, %s760_s9  ;;  %p769_p3 = scmp.lt.u32.totalorder %s760_s9, %s1186_s12 }
  0x3e   : > { %p763_p5 = pnand %p762_p6, %p761_p4 }
  0x3f   : > { %p768_p1 = por %p767_p9, %p766_p13 }
  0x40   : > { %p764_p8 = pneg %p763_p5 }
  0x41   : > { %p770_p10 = por %p769_p3, %p768_p1 }
  0x43   : > { %p771_p2 = pnand %p770_p10, %p764_p8 }
  0x45   : > { %774 = shalt.err (!%p771_p2)
}
  0x46   : > { %s775_s5 = scalar_lea.vmem %s1188_s14, 64  ;;  %s988_s8 = smov [#allocation3]  }
  0x47   : > { %p776_p4 = scmp.ne.s32.totalorder %s1188_s14, %s775_s5  ;;  %s780_s11 = sshll.u32 %s988_s8, 4  ;;  %s781_s11 = int_to_ptr.vmem [resolvable:$false] %s780_s11 }
  0x48   : > { %s782_s7 = scalar_lea.vmem %s781_s11, 128  ;;  %p783_p7 = scmp.lt.s32.totalorder %s1188_s14, %s781_s11 }
  0x49   : > { %p778_p5 = pnand %p776_p4, %p762_p6  ;;  %p784_p13 = scmp.lt.s32.totalorder %s782_s7, %s775_s5 }
  0x4b   : > { %p779_p0 = pneg %p778_p5  ;;  %p785_p9 = por %p784_p13, %p783_p7 }
  0x4d   : > { %p786_p1 = pnand %p785_p9, %p779_p0 }
  0x4f   : > { %789 = shalt.err (!%p786_p1)
}
  0x50   : > { %609 = dma.hbm_to_vmem [thread:$0]  (!%p1194_p11), %s1186_s12, 64, %s1188_s14, %s170_s28  }
  0x51   : > { %p1447_p2 = scmp.lt.s32.totalorder %s986_s27, 9  ;;  %p1448_p10 = scmp.ge.s32.totalorder %s986_s27, 1 }
  0x52   : > { %s189_s18 = sand.u32 1, %s946_s17   ;;  %s199_s15 = sadd.s32 %s978_s25, %s570_s4 }
  0x53   : > { %p1238_p3 = pnand %p1448_p10, %p1447_p2  ;;  %s546_s30 = sshll.u32 %s189_s18, 6 }
  0x54   : > { %s549_s5 = sshll.u32 %s199_s15, 6  ;;  %s193_s12 = scalar_lea.vmem [#allocation6], %s546_s30 }
  0x55   : > { %s1249_s7 = scalar_lea.hbm %s1409_s1, %s549_s5  ;;  %s202_s14 = sshll.u32 %s193_s12, 4  ;;  %s1251_s14 = int_to_ptr.vmem [resolvable:$true] %s202_s14 }
  0x56   : > { %s1253_s28 = scalar_lea.sflag [#allocation7], %s189_s18  ;;  %s790_s0 = scalar_lea.hbm %s1249_s7, 1024 }
  0x57   : > { %p791_p7 = scmp.ne.s32.totalorder %s1249_s7, %s790_s0  ;;  %p792_p0 = pneg %p1203_p12 }
  0x58   : > { %s795_s5 = scalar_lea.hbm %s1409_s1, 4096  ;;  %p796_p8 = scmp.lt.u32.totalorder %s1249_s7, %s1409_s1 }
  0x59   : > { %p793_p11 = pnand %p792_p0, %p791_p7  ;;  %p797_p4 = scmp.lt.u32.totalorder %s795_s5, %s790_s0 }
  0x5a   : > { %p799_p13 = scmp.lt.u32.totalorder %s790_s0, %s1249_s7 }
  0x5b   : > { %p794_p6 = pneg %p793_p11  ;;  %p798_p5 = por %p797_p4, %p796_p8 }
  0x5d   : > { %p800_p9 = por %p799_p13, %p798_p5 }
  0x5f   : > { %p801_p1 = pnand %p800_p9, %p794_p6 }
  0x61   : > { %804 = shalt.err (!%p801_p1)
}
  0x62   : > { %s805_s18 = scalar_lea.vmem %s1251_s14, 1024  ;;  %s989_s30 = smov [#allocation6]  }
  0x63   : > { %p806_p2 = scmp.ne.s32.totalorder %s1251_s14, %s805_s18  ;;  %s810_s12 = sshll.u32 %s989_s30, 4  ;;  %s811_s12 = int_to_ptr.vmem [resolvable:$false] %s810_s12 }
  0x64   : > { %s812_s4 = scalar_lea.vmem %s811_s12, 2048  ;;  %p813_p11 = scmp.lt.s32.totalorder %s1251_s14, %s811_s12 }
  0x65   : > { %p808_p10 = pnand %p806_p2, %p792_p0  ;;  %p814_p8 = scmp.lt.s32.totalorder %s812_s4, %s805_s18 }
  0x67   : > { %p809_p7 = pneg %p808_p10  ;;  %p815_p4 = por %p814_p8, %p813_p11 }
  0x69   : > { %p816_p5 = pnand %p815_p4, %p809_p7 }
  0x6b   : > { %819 = shalt.err (!%p816_p5)
}
  0x6c   : > { %s990_s0 = smov 128   ;;  %s991_s15 = smov 64  }
  0x6d   : > { %s992_s5 = smov 4   ;;  %220 = sbr.rel (%p1238_p3) target bundleno = 416 (0x1a0), region = 32 }
  0x6e   : > { %612 = dma.hbm_to_vmem [thread:$0]  (!%p1203_p12), %s1249_s7, 1024, %s1251_s14, %s1253_s28, %s990_s0, %s991_s15, %s992_s5  }
  0x6f   : > { %s222_s8 = sand.u32 (!%p1238_p3), 1, %s954_s19   ;;  %p1450_p0 = scmp.ne.s32.totalorder (!%p1238_p3), %s1432_s10, 0 }
  0x70   : > { %s1284_s11 = sshll.u32 (!%p1238_p3), %s222_s8, 2  ;;  %s223_s18 = scalar_lea.sflag (!%p1238_p3), [#allocation4], %s222_s8 }
  0x71   : > { %s226_s30 = scalar_lea.vmem (!%p1238_p3), [#allocation3], %s1284_s11 }
  0x74   : > { %913 = dma.done.wait (%p1450_p0), %s223_s18, 64  }
  0x75   : > { %915 = vsyncadd (%p1450_p0), %s223_s18, 4294967232  ;;  %s231_s3 = sand.u32 1, %s942_s16   ;;  %p1451_p12 = scmp.ne.s32.totalorder %s1436_s29, 0 }
  0x76   : > { %s552_s7 = sshll.u32 %s231_s3, 6  ;;  %s232_s14 = scalar_lea.sflag [#allocation7], %s231_s3 }
  0x77   : > { %s1292_s9 = scalar_lea.vmem [#allocation6], %s552_s7 }
  0x78   : > { %917 = dma.done.wait (%p1451_p12), %s232_s14, 1024  }
  0x79   : > { %919 = vsyncadd (%p1451_p12), %s232_s14, 4294966272  ;;  %s263_s28 = sand.u32 1, %s930_s13   ;;  %p267_p3 = scmp.lt.s32.totalorder %s966_s22, 1 }
  0x7a   : > { %s1302_s10 = sshll.u32 %s263_s28, 3  ;;  %p554_p6 = scmp.ne.s32.totalorder %s962_s21, 0 }
  0x7b   : > { %s268_s12 = scalar_select %p267_p3, %s966_s22, 1 }
  0x7c   : > { %s265_s5 = scalar_lea.vmem [#allocation8], %s1302_s10  ;;  %274 = sbr.rel (%p554_p6) target bundleno = 131 (0x83), region = 44 }
  0x7d   : > { %s269_s15 = scalar_lea.vmem %s1410_s2, %s268_s12 }
  0x7e   : > { %v555_v0 = vld [vmem:[%s269_s15] ss:$0 sm:$0xff] (!%p554_p6) }
  0x7f   : > { %282 = vst [vmem:[#allocation2] sm:$0xff] (!%p554_p6), %v555_v0 }
  0x83 PF: > { %v752_v1 = vld [vmem:[%s1292_s9] sm:$0xff]   ;;  %v993_v2 = vmov 0.0   ;;  %v753_v3 = vld [vmem:[%s1292_s9 + $0x8] sm:$0xff]   ;;  %vm994_vm0 = vmmov 0   ;;  %v754_v4 = vld [vmem:[%s1292_s9 + $0x10] sm:$0xff]   ;;  %p564_p13 = scmp.ne.s32.totalorder %s962_s21, 1 }
  0x84   : > { %580 = vmatprep.subr.bf16.mxu0 %v993_v2  ;;  %596 = vmatprep.mubr.msk.bf16.mxu0 %vm994_vm0, %v993_v2  ;;  %v755_v5 = vld [vmem:[%s1292_s9 + $0x18] sm:$0xff]   ;;  %v756_v6 = vld [vmem:[%s1292_s9 + $0x20] sm:$0xff]   ;;  %v757_v7 = vld [vmem:[%s1292_s9 + $0x28] sm:$0xff]  }
  0x85   : > { %581 = vmatpush3.bf16.msra.mxu0 %v752_v1  ;;  %v758_v8 = vld [vmem:[%s1292_s9 + $0x30] sm:$0xff]   ;;  %v759_v9 = vld [vmem:[%s1292_s9 + $0x38] sm:$0xff]  }
  0x86   : > { %582 = vmatprep.subr.bf16.mxu0 %v993_v2  ;;  %v284_v10 = vld [vmem:[%s226_s30] sm:$0xf]  ;;  %v283_v11 = vld [vmem:[#allocation2] sm:$0xff] }
  0x89   : > { %583 = vmatpush3.bf16.msra.mxu0 %v753_v3 }
  0x8a   : > { %584 = vmatprep.subr.bf16.mxu0 %v993_v2 }
  0x8d   : > { %585 = vmatpush3.bf16.msra.mxu0 %v754_v4 }
  0x8e   : > { %586 = vmatprep.subr.bf16.mxu0 %v993_v2 }
  0x91   : > { %587 = vmatpush3.bf16.msra.mxu0 %v755_v5 }
  0x92   : > { %588 = vmatprep.subr.bf16.mxu0 %v993_v2 }
  0x95   : > { %589 = vmatpush3.bf16.msra.mxu0 %v756_v6 }
  0x96   : > { %590 = vmatprep.subr.bf16.mxu0 %v993_v2 }
  0x99   : > { %591 = vmatpush3.bf16.msra.mxu0 %v757_v7 }
  0x9a   : > { %592 = vmatprep.subr.bf16.mxu0 %v993_v2 }
  0x9d   : > { %593 = vmatpush3.bf16.msra.mxu0 %v758_v8 }
  0x9e   : > { %594 = vmatprep.subr.bf16.mxu0 %v993_v2 }
  0xa1   : > { %595 = vmatpush3.bf16.msra.mxu0 %v759_v9 }
  0xa4   : > { %597 = vmatmul.mubr.bf16.vlgmr.msra.gmra.mrb[0].mxu0 %v284_v10 }
 0x174   : > { %394 = sbr.rel (%p564_p13) target bundleno = 389 (0x185), region = 48 }
 0x177   : > { %v383_v12 = vpop.f32.mrb[0].mxu0 }
 0x178   : > { %v389_v13 = vadd.f32 %v383_v12, %v283_v11  ;;  %v598_v14 = vpop.f32.mrb[1].mxu0 }
 0x179   : > { %v386_v15 = vpop.f32.mrb[2].mxu0 }
 0x17a   : > { %390 = vst [vmem:[#allocation2] sm:$0xff] %v389_v13  ;;  %v599_v16 = vpop.f32.mrb[3].mxu0 }
 0x181   : > { %v395_v17 = vld [vmem:[#allocation2] sm:$0xff] }
 0x182   : > { %v396_v18 = vmax.f32 %v395_v17, 0.0 }
 0x184   : > { %397 = vst [vmem:[%s265_s5] sm:$0xff] %v396_v18 }
 0x185 PF: > { %s1452_s29 = sld [smem:[#allocation20_spill]]  ;;  %s566_s8 = sshll.u32 %s970_s23, 1 }
 0x186   : > { %s410_s11 = sadd.s32 %s966_s22, %s566_s8  ;;  %s414_s18 = sshll.u32 %s265_s5, 4  ;;  %s1327_s18 = int_to_ptr.vmem [resolvable:$true] %s414_s18 }
 0x187   : > { %s567_s30 = sshll.u32 %s410_s11, 7  ;;  %s1453_s7 = sld [smem:[#allocation22_spill]] }
 0x188   : > { %s399_s9 = scalar_lea.sflag [#allocation5], %s263_s28  ;;  %s820_s12 = scalar_lea.vmem %s1327_s18, 128 }
 0x189   : > { %p821_p9 = scmp.ne.s32.totalorder %s1327_s18, %s820_s12  ;;  %s995_s22 = smov [#allocation8]  }
 0x18a   : > { %s824_s23 = sshll.u32 %s995_s22, 4  ;;  %s825_s23 = int_to_ptr.vmem [resolvable:$false] %s824_s23 }
 0x18b   : > { %p1454_p1 = scmp.ne.s32.totalorder %s1452_s29, 0  ;;  %s826_s10 = scalar_lea.vmem %s825_s23, 256 }
 0x18c   : > { %p827_p7 = scmp.lt.s32.totalorder %s1327_s18, %s825_s23  ;;  %p828_p11 = scmp.lt.s32.totalorder %s826_s10, %s820_s12 }
 0x18d   : > { %s412_s14 = scalar_lea.hbm %s1453_s7, %s567_s30  ;;  %p822_p2 = pnand %p821_p9, %p1454_p1 }
 0x18e   : > { %p829_p8 = por %p828_p11, %p827_p7 }
 0x18f   : > { %p823_p10 = pneg %p822_p2 }
 0x191   : > { %p830_p4 = pnand %p829_p8, %p823_p10 }
 0x193   : > { %833 = shalt.err (!%p830_p4)
}
 0x194   : > { %s834_s4 = scalar_lea.hbm %s412_s14, 128  ;;  %s838_s15 = scalar_lea.hbm %s1453_s7, 512 }
 0x195   : > { %p835_p5 = scmp.ne.s32.totalorder %s412_s14, %s834_s4  ;;  %p839_p3 = scmp.lt.u32.totalorder %s412_s14, %s1453_s7 }
 0x196   : > { %p840_p6 = scmp.lt.u32.totalorder %s838_s15, %s834_s4  ;;  %p842_p9 = scmp.lt.u32.totalorder %s834_s4, %s412_s14 }
 0x197   : > { %p836_p0 = pnand %p835_p5, %p1454_p1 }
 0x198   : > { %p841_p13 = por %p840_p6, %p839_p3 }
 0x199   : > { %p837_p12 = pneg %p836_p0 }
 0x19a   : > { %p843_p2 = por %p842_p9, %p841_p13 }
 0x19c   : > { %p844_p10 = pnand %p843_p2, %p837_p12 }
 0x19e   : > { %847 = shalt.err (!%p844_p10)
}
 0x19f   : > { %604 = dma.vmem_to_hbm [thread:$0]  (%p1454_p1), %s1327_s18, 128, %s412_s14, %s399_s9  }
 0x1a0 PF: > { %s1455_s11 = sld [smem:[#allocation12_spill]]  ;;  %p618_p7 = scmp.ge.s32.totalorder %s986_s27, 2 }
 0x1a1   : > { %p1456_p11 = scmp.ne.s32.totalorder %s1443_s6, 0 }
 0x1a3   : > { %p614_p8 = pnand %p618_p7, %p1456_p11 }
 0x1a6   : > { %s426_s30 = sand.u32 1, %s1455_s11  }
 0x1a7   : > { %s427_s21 = scalar_lea.sflag [#allocation5], %s426_s30 }
 0x1a8   : > { %921 = dma.done.wait (!%p614_p8), %s427_s21, 128  }
 0x1a9   : > { %923 = vsyncadd (!%p614_p8), %s427_s21, 4294967168  ;;  %s22_s27 = sadd.s32 1, %s986_s27   ;;  %s1458_s29 = sld [smem:[#allocation13_spill]] }
 0x1aa   : > { %p1355_p4 = scmp.ge.s32.totalorder %s22_s27, 10   ;;  %s1459_s14 = sld [smem:[#allocation19_spill]] }
 0x1ab   : > { %s1460_s18 = sld [smem:[#allocation17_spill]]  ;;  %s1461_s9 = sld [smem:[#allocation18_spill]] }
 0x1ac   : > { %s1462_s6 = sld [smem:[#allocation14_spill]]  ;;  %s1463_s10 = sld [smem:[#allocation15_spill]] }
 0x1ad   : > { %s1464_s4 = sld [smem:[#allocation16_spill]]  ;;  %s1465_s12 = smov %s930_s13 }
 0x1ae   : > { %s1467_s15 = smov %s942_s16  ;;  %s1468_s16 = smov %s946_s17 }
 0x1af   : > { %s1466_s13 = smov %s1458_s29  ;;  %s1473_s21 = smov %s974_s24 }
 0x1b0   : > { %s1474_s22 = smov %s978_s25  ;;  %s1475_s23 = smov %s982_s26 }
 0x1b1   : > { %s1469_s17 = smov %s1460_s18  ;;  %s1470_s18 = smov %s954_s19 }
 0x1b2   : > { %s1471_s19 = smov %s958_s20  ;;  %s1472_s20 = smov %s1461_s9 }
 0x1b3   : > { %s1476_s24 = smov %s1462_s6  ;;  %s1477_s25 = smov %s1463_s10 }
 0x1b4   : > { %s1478_s26 = smov %s1464_s4  ;;  %21 = sbr.rel (!%p1355_p4) target bundleno = 16 (0x10), region = 101 }
 0x1bb   :  { %432 = vsyncpa [#allocation4], 1 }
 0x1bc   :  { %434 = vsyncpa [#allocation4 + $0x1], 1 }
 0x1bd   :  { %435 = vsyncpa [#allocation7], 1 }
 0x1be   :  { %437 = vsyncpa [#allocation7 + $0x1], 1 }
 0x1bf   :  { %438 = vsyncpa [#allocation5], 1 }
 0x1c0   :  { %440 = vsyncpa [#allocation5 + $0x1], 1 }

</bundles_post_ra>
